<compile_context>
chip_gen: v6e
topology: v6e:2x2x1
jax: 0.10.0
libtpu: 0.0.40
codegen_flags: <defaults>
</compile_context>

<pallas_src>
import jax
import jax.numpy as jnp
from jax.experimental import pallas as pl
from jax.experimental.pallas import tpu as pltpu


def _round_up(n, m):
    return ((n + m - 1) // m) * m


def _sublane(dtype):
    # Sublane packing granularity per dtype width (f32: 8, bf16: 16, int8/fp8: 32).
    return {4: 8, 2: 16, 1: 32}.get(jnp.dtype(dtype).itemsize, 8)


def dqn_kernel(x_ref, w1_ref, b1_ref, w2_ref, b2_ref, w3_ref, b3_ref, out_ref):
    # x tile: (TB, state_size). Weights/biases: full arrays, VMEM-resident
    # (their index_map returns block (0, 0) on every grid step).
    x = x_ref[...]  # no upcast — MXU takes f32 or bf16 operands directly

    # head: Linear(state_size, hidden_pad) + ReLU   (f32 accumulation on the MXU)
    h = jnp.dot(x, w1_ref[...], preferred_element_type=jnp.float32)
    h = jnp.maximum(h + b1_ref[...], 0.0)

    # ff_1: Linear(hidden_pad, hidden_pad) + ReLU
    h = jnp.dot(h.astype(w2_ref.dtype), w2_ref[...],
                preferred_element_type=jnp.float32)
    h = jnp.maximum(h + b2_ref[...], 0.0)

    # ff_2: Linear(hidden_pad, action_size)  — only the real action columns are
    # produced/stored, so the output DMA is not lane-padded.
    o = jnp.dot(h.astype(w3_ref.dtype), w3_ref[...],
                preferred_element_type=jnp.float32)
    out_ref[...] = (o + b3_ref[...]).astype(out_ref.dtype)


def dqn_forward(x, params, *, tb_max=4096):
    """x: (B, state_size). params: transposed weights/biases (see init_params)."""
    w1, b1, w2, b2, w3, b3 = (
        params["w1"], params["b1"], params["w2"],
        params["b2"], params["w3"], params["b3"],
    )
    B, state_size = x.shape
    hidden = w1.shape[1]
    action_size = w3.shape[1]
    out_dtype = jnp.result_type(x.dtype, w1.dtype)

    # --- lane-dense hidden: zero-pad hidden features to a multiple of 128.
    # Zero columns stay exactly zero through the ReLU and contribute nothing
    # downstream, so the math is unchanged; weights are VMEM-resident so this
    # adds no per-step HBM traffic.
    hid_pad = _round_up(hidden, 128)
    if hid_pad != hidden:
        w1 = jnp.zeros((state_size, hid_pad), w1.dtype).at[:, :hidden].set(w1)
        b1 = jnp.zeros((hid_pad,), b1.dtype).at[:hidden].set(b1)
        w2 = jnp.zeros((hid_pad, hid_pad), w2.dtype).at[:hidden, :hidden].set(w2)
        b2 = jnp.zeros((hid_pad,), b2.dtype).at[:hidden].set(b2)
        w3 = jnp.zeros((hid_pad, action_size), w3.dtype).at[:hidden, :].set(w3)

    # Biases as (1, F) rows so they broadcast over the batch tile in-kernel.
    b1 = b1.reshape(1, hid_pad)
    b2 = b2.reshape(1, hid_pad)
    b3 = b3.reshape(1, action_size)

    # --- batch tiling: no wholesale jnp.pad of x; Pallas masks the ragged last
    # block, and the per-row math never mixes out-of-bounds rows into valid rows.
    sub = max(_sublane(x.dtype), _sublane(out_dtype))
    tb_cap = max(sub, (int(tb_max) // sub) * sub)
    if B <= sub:
        TB = B                 # single block == full batch dim (full-dim exception)
    elif B < 2 * sub:
        TB = sub               # two tiles, ragged (masked) last block
    else:
        # >= 2 grid steps so v7x can shard the batch over both TensorCores,
        # capped at tb_cap so per-step DMA stays large vs. ~0.35us step overhead.
        TB = min(tb_cap, _round_up(pl.cdiv(B, 2), sub))
    grid = (pl.cdiv(B, TB),)

    # Weight / bias specs always return block (0, 0): fetched once, stay in VMEM.
    resident = lambda a: pl.BlockSpec(a.shape, lambda i: (0, 0))

    # VMEM budget guard for large hidden sizes (resident weights are
    # double-buffered by default, plus in/out tiles and f32 intermediates).
    resident_bytes = sum(int(a.size) * jnp.dtype(a.dtype).itemsize
                         for a in (w1, b1, w2, b2, w3, b3))
    tile_bytes = (TB * state_size * jnp.dtype(x.dtype).itemsize
                  + TB * action_size * jnp.dtype(out_dtype).itemsize)
    interm_bytes = 2 * TB * hid_pad * 4
    vmem_needed = 2 * (resident_bytes + tile_bytes) + interm_bytes + (2 << 20)
    vmem_limit = (min(vmem_needed, 96 * 1024 * 1024)
                  if vmem_needed > 32 * 1024 * 1024 else None)

    out = pl.pallas_call(
        dqn_kernel,
        out_shape=jax.ShapeDtypeStruct((B, action_size), out_dtype),
        grid_spec=pltpu.PrefetchScalarGridSpec(
            num_scalar_prefetch=0,
            grid=grid,
            in_specs=[
                pl.BlockSpec((TB, state_size), lambda i: (i, 0)),   # x tile
                resident(w1), resident(b1),
                resident(w2), resident(b2),
                resident(w3), resident(b3),
            ],
            out_specs=pl.BlockSpec((TB, action_size), lambda i: (i, 0)),
        ),
        compiler_params=pltpu.CompilerParams(
            dimension_semantics=("parallel",),   # v7x: shard batch over both TCs
            vmem_limit_bytes=vmem_limit,
        ),
    )(x, w1, b1, w2, b2, w3, b3)
    return out


def init_params(key, state_size, action_size, hidden_dim):
    """Deterministic synthetic init matching nn.Linear shapes.

    PyTorch nn.Linear(in, out) has weight (out, in), bias (out,).
    We store weights transposed to (in, out) for y = x @ W + b.
    """
    ks = jax.random.split(key, 6)

    def linear(kw, kb, fan_in, fan_out):
        bound = 1.0 / jnp.sqrt(jnp.float32(fan_in))
        w = jax.random.uniform(kw, (fan_in, fan_out), jnp.float32, -bound, bound)
        b = jax.random.uniform(kb, (fan_out,), jnp.float32, -bound, bound)
        return w, b

    w1, b1 = linear(ks[0], ks[1], state_size, hidden_dim)   # head
    w2, b2 = linear(ks[2], ks[3], hidden_dim, hidden_dim)   # ff_1
    w3, b3 = linear(ks[4], ks[5], hidden_dim, action_size)  # ff_2
    return {"w1": w1, "b1": b1, "w2": w2, "b2": b2, "w3": w3, "b3": b3}


def _reference(x, params):
    dot = lambda a, b: jnp.dot(a, b, precision=jax.lax.Precision.HIGHEST)
    h = jnp.maximum(dot(x, params["w1"]) + params["b1"], 0.0)
    h = jnp.maximum(dot(h, params["w2"]) + params["b2"], 0.0)
    return dot(h, params["w3"]) + params["b3"]


if __name__ == "__main__":
    # Small shapes consistent with the module: x is (batch, state_size).
    batch = 16
    state_size = 16
    action_size = 4
    hidden_dim = 32

    key = jax.random.PRNGKey(0)
    k_params, k_x = jax.random.split(key)
    params = init_params(k_params, state_size, action_size, hidden_dim)
    x = jax.random.normal(k_x, (batch, state_size), jnp.float32)
    ref = _reference(x, params)

    # Multi-tile f32 path: TB=8 -> grid=(2,) (batch shardable across v7x TCs).
    out = jax.block_until_ready(dqn_forward(x, params))
    assert out.shape == (batch, action_size) and out.dtype == jnp.float32
    assert jnp.allclose(out, ref, atol=2e-2, rtol=2e-2), "f32 mismatch"

    # Ragged last tile: B=13 -> grid=(2,), last block has 5 valid (masked) rows.
    out_odd = jax.block_until_ready(dqn_forward(x[:13], params))
    assert out_odd.shape == (13, action_size)
    assert jnp.allclose(out_odd, ref[:13], atol=2e-2, rtol=2e-2), "ragged mismatch"

    # Tiny batch: single block equal to the full (non-8-multiple) batch dim.
    out_tiny = jax.block_until_ready(dqn_forward(x[:5], params))
    assert out_tiny.shape == (5, action_size)
    assert jnp.allclose(out_tiny, ref[:5], atol=2e-2, rtol=2e-2), "tiny mismatch"

    # bf16 end-to-end: output dtype follows the run dtype (halved HBM writeback).
    params_bf16 = jax.tree_util.tree_map(lambda a: a.astype(jnp.bfloat16), params)
    out_bf16 = jax.block_until_ready(
        dqn_forward(x.astype(jnp.bfloat16), params_bf16))
    assert out_bf16.shape == (batch, action_size) and out_bf16.dtype == jnp.bfloat16
    assert jnp.allclose(out_bf16.astype(jnp.float32), ref, atol=1e-1, rtol=1e-1), \
        "bf16 mismatch"

    print("KERNEL_OK")
</pallas_src>

<mosaic_0001>
module attributes {stable_mosaic.version = 11 : i64} {
  func.func @dqn_kernel(%arg0: i32, %arg1: memref<8x16xf32, #tpu.memory_space<vmem>>, %arg2: memref<16x128xf32, #tpu.memory_space<vmem>>, %arg3: memref<1x128xf32, #tpu.memory_space<vmem>>, %arg4: memref<128x128xf32, #tpu.memory_space<vmem>>, %arg5: memref<1x128xf32, #tpu.memory_space<vmem>>, %arg6: memref<128x4xf32, #tpu.memory_space<vmem>>, %arg7: memref<1x4xf32, #tpu.memory_space<vmem>>, %arg8: memref<8x4xf32, #tpu.memory_space<vmem>>) attributes {dimension_semantics = [#tpu.dimension_semantics<parallel>], iteration_bounds = array<i64: 2>, scalar_prefetch = 0 : i64, scratch_operands = 0 : i64, tpu.core_type = #tpu.core_type<tc>, window_params = [{transform_indices = @transform_0, window_bounds = array<i64: 8, 16>}, {pipeline_mode = #tpu.pipeline_mode<synchronous>, transform_indices = @transform_1, window_bounds = array<i64: 16, 128>}, {pipeline_mode = #tpu.pipeline_mode<synchronous>, transform_indices = @transform_2, window_bounds = array<i64: 1, 128>}, {pipeline_mode = #tpu.pipeline_mode<synchronous>, transform_indices = @transform_3, window_bounds = array<i64: 128, 128>}, {pipeline_mode = #tpu.pipeline_mode<synchronous>, transform_indices = @transform_4, window_bounds = array<i64: 1, 128>}, {pipeline_mode = #tpu.pipeline_mode<synchronous>, transform_indices = @transform_5, window_bounds = array<i64: 128, 4>}, {pipeline_mode = #tpu.pipeline_mode<synchronous>, transform_indices = @transform_6, window_bounds = array<i64: 1, 4>}, {transform_indices = @transform_7, window_bounds = array<i64: 8, 4>}]} {
    %c0 = arith.constant 0 : index
    %c0_0 = arith.constant 0 : index
    %0 = vector.load %arg1[%c0, %c0_0] : memref<8x16xf32, #tpu.memory_space<vmem>>, vector<8x16xf32>
    %c0_1 = arith.constant 0 : index
    %c0_2 = arith.constant 0 : index
    %1 = vector.load %arg2[%c0_1, %c0_2] : memref<16x128xf32, #tpu.memory_space<vmem>>, vector<16x128xf32>
    %cst = arith.constant dense<0.000000e+00> : vector<8x128xf32>
    %2 = tpu.matmul %0, %1, %cst {dimension_numbers = #tpu.dot_dimension_numbers<[1], [0], [0], [1], [0, 0, 1, 1], [], []>} : vector<8x16xf32>, vector<16x128xf32>, vector<8x128xf32> -> vector<8x128xf32>
    %c0_3 = arith.constant 0 : index
    %c0_4 = arith.constant 0 : index
    %3 = vector.load %arg3[%c0_3, %c0_4] : memref<1x128xf32, #tpu.memory_space<vmem>>, vector<1x128xf32>
    %4 = vector.broadcast %3 : vector<1x128xf32> to vector<8x128xf32>
    %5 = arith.addf %2, %4 : vector<8x128xf32>
    %cst_5 = arith.constant 0.000000e+00 : f32
    %6 = vector.broadcast %cst_5 : f32 to vector<8x128xf32>
    %7 = arith.maximumf %5, %6 : vector<8x128xf32>
    %c0_6 = arith.constant 0 : index
    %c0_7 = arith.constant 0 : index
    %8 = vector.load %arg4[%c0_6, %c0_7] : memref<128x128xf32, #tpu.memory_space<vmem>>, vector<128x128xf32>
    %cst_8 = arith.constant dense<0.000000e+00> : vector<8x128xf32>
    %9 = tpu.matmul %7, %8, %cst_8 {dimension_numbers = #tpu.dot_dimension_numbers<[1], [0], [0], [1], [0, 0, 1, 1], [], []>} : vector<8x128xf32>, vector<128x128xf32>, vector<8x128xf32> -> vector<8x128xf32>
    %c0_9 = arith.constant 0 : index
    %c0_10 = arith.constant 0 : index
    %10 = vector.load %arg5[%c0_9, %c0_10] : memref<1x128xf32, #tpu.memory_space<vmem>>, vector<1x128xf32>
    %11 = vector.broadcast %10 : vector<1x128xf32> to vector<8x128xf32>
    %12 = arith.addf %9, %11 : vector<8x128xf32>
    %cst_11 = arith.constant 0.000000e+00 : f32
    %13 = vector.broadcast %cst_11 : f32 to vector<8x128xf32>
    %14 = arith.maximumf %12, %13 : vector<8x128xf32>
    %c0_12 = arith.constant 0 : index
    %c0_13 = arith.constant 0 : index
    %15 = vector.load %arg6[%c0_12, %c0_13] : memref<128x4xf32, #tpu.memory_space<vmem>>, vector<128x4xf32>
    %cst_14 = arith.constant dense<0.000000e+00> : vector<8x4xf32>
    %16 = tpu.matmul %14, %15, %cst_14 {dimension_numbers = #tpu.dot_dimension_numbers<[1], [0], [0], [1], [0, 0, 1, 1], [], []>} : vector<8x128xf32>, vector<128x4xf32>, vector<8x4xf32> -> vector<8x4xf32>
    %c0_15 = arith.constant 0 : index
    %c0_16 = arith.constant 0 : index
    %17 = vector.load %arg7[%c0_15, %c0_16] : memref<1x4xf32, #tpu.memory_space<vmem>>, vector<1x4xf32>
    %18 = vector.broadcast %17 : vector<1x4xf32> to vector<8x4xf32>
    %19 = arith.addf %16, %18 : vector<8x4xf32>
    %c0_17 = arith.constant 0 : index
    %c0_18 = arith.constant 0 : index
    %20 = vector.load %arg8[%c0_17, %c0_18] : memref<8x4xf32, #tpu.memory_space<vmem>>, vector<8x4xf32>
    tpu.vector_store %arg8[%c0_17, %c0_18], %19 {strides = array<i32>} : memref<8x4xf32, #tpu.memory_space<vmem>>, vector<8x4xf32>,
    return
  }
  func.func @transform_0(%arg0: i32) -> (i32, i32) {
    %c0_i32 = arith.constant 0 : i32
    %c0_i32_0 = arith.constant 0 : i32
    return %arg0, %c0_i32 : i32, i32
  }
  func.func @transform_1(%arg0: i32) -> (i32, i32) {
    %c0_i32 = arith.constant 0 : i32
    %c0_i32_0 = arith.constant 0 : i32
    %c0_i32_1 = arith.constant 0 : i32
    return %c0_i32, %c0_i32_0 : i32, i32
  }
  func.func @transform_2(%arg0: i32) -> (i32, i32) {
    %c0_i32 = arith.constant 0 : i32
    %c0_i32_0 = arith.constant 0 : i32
    %c0_i32_1 = arith.constant 0 : i32
    return %c0_i32, %c0_i32_0 : i32, i32
  }
  func.func @transform_3(%arg0: i32) -> (i32, i32) {
    %c0_i32 = arith.constant 0 : i32
    %c0_i32_0 = arith.constant 0 : i32
    %c0_i32_1 = arith.constant 0 : i32
    return %c0_i32, %c0_i32_0 : i32, i32
  }
  func.func @transform_4(%arg0: i32) -> (i32, i32) {
    %c0_i32 = arith.constant 0 : i32
    %c0_i32_0 = arith.constant 0 : i32
    %c0_i32_1 = arith.constant 0 : i32
    return %c0_i32, %c0_i32_0 : i32, i32
  }
  func.func @transform_5(%arg0: i32) -> (i32, i32) {
    %c0_i32 = arith.constant 0 : i32
    %c0_i32_0 = arith.constant 0 : i32
    %c0_i32_1 = arith.constant 0 : i32
    return %c0_i32, %c0_i32_0 : i32, i32
  }
  func.func @transform_6(%arg0: i32) -> (i32, i32) {
    %c0_i32 = arith.constant 0 : i32
    %c0_i32_0 = arith.constant 0 : i32
    %c0_i32_1 = arith.constant 0 : i32
    return %c0_i32, %c0_i32_0 : i32, i32
  }
  func.func @transform_7(%arg0: i32) -> (i32, i32) {
    %c0_i32 = arith.constant 0 : i32
    %c0_i32_0 = arith.constant 0 : i32
    return %arg0, %c0_i32 : i32, i32
  }
}

</mosaic_0001>

<bundles_post_ra>
// kernel: tpu_custom_call.1
= control target key start
LH: loop header
LB: loop body
LE: loop exit
PB: predicated region body
PF: predicated region fallthrough
CT: control target
= control target key end

     0   :  { %12 = vsyncpa [#allocation3], 0  ;;  %s1244_s0 = inlined_call_operand.hbm [shape: f32[16,16], index: 0, kind: input, shape index: {}]   ;;  %s1245_s1 = inlined_call_operand.hbm [shape: f32[16,128], index: 1, kind: input, shape index: {}]   ;;  %s1246_s2 = inlined_call_operand.vmem [shape: f32[1,128], index: 2, kind: input, shape index: {}]   ;;  %s1247_s3 = inlined_call_operand.vmem [shape: f32[128,128], index: 3, kind: input, shape index: {}]   ;;  %s1248_s4 = inlined_call_operand.vmem [shape: f32[1,128], index: 4, kind: input, shape index: {}]   ;;  %s1249_s5 = inlined_call_operand.vmem [shape: f32[128,4], index: 5, kind: input, shape index: {}]   ;;  %s1250_s6 = inlined_call_operand.vmem [shape: f32[1,4], index: 6, kind: input, shape index: {}]   ;;  %s1251_s7 = inlined_call_operand.vmem [shape: f32[16,4], index: 7, kind: output, shape index: {}]  }
   0x1   :  { %14 = vsyncpa [#allocation3 + $0x1], 0 }
   0x2   :  { %15 = vsyncpa [#allocation5], 0  ;;  %s982_s24 = smov 0   ;;  %s984_s25 = smov 0  }
   0x3   :  { %s986_s26 = smov 0   ;;  %s988_s27 = smov 0  }
   0x4 LB: > { %s1001_s28 = sadd.s32 4294967295, %s934_s27   ;;  %p41_p0 = scmp.ne.s32.totalorder %s926_s25, %s922_s24  ;;  %s934_s27 = sphi %s988_s27, %s1266_s27   ;;  %s930_s26 = sphi %s986_s26, %s1265_s26   ;;  %s926_s25 = sphi %s984_s25, %s1264_s25   ;;  %s922_s24 = sphi %s982_s24, %s1263_s24  }
   0x5   : > { %p1252_p1 = scmp.eq.s32.totalorder %s1001_s28, 0  ;;  %p659_p2 = scmp.ge.s32.totalorder %s934_s27, 1 }
   0x6   : > { %p204_p3 = scmp.lt.s32.totalorder %s934_s27, 3  ;;  %s936_s8 = smov [#allocation4]  }
   0x7   : > { %p1009_p4 = por %p1252_p1, %p41_p0  ;;  %s216_s9 = sshll.u32 %s936_s8, 4  ;;  %s217_s9 = int_to_ptr.vmem [resolvable:$true] %s216_s9 }
   0x8   : > { %p1013_p5 = pnand %p659_p2, %p204_p3  ;;  %s1026_s11 = sadd.s32 1, %s934_s27  }
   0x9   : > { %s1255_s29 = scalar_select %p1009_p4, 1, 0 }
   0xa   : > { %s1256_s30 = scalar_select %p1013_p5, 1, 0 }
   0xb   : > { %p794_p6 = pneg %p1013_p5  ;;  %s28_s12 = sadd.s32 1, %s930_s26 }
   0xc   : > { %s25_s13 = ssub.s32 %s934_s27, %s1026_s11  ;;  %s853_s14 = scalar_lea.vmem %s217_s9, 256 }
   0xd   : > { %p1021_p7 = pnand %p794_p6, %p1252_p1  ;;  %p854_p9 = scmp.ne.s32.totalorder %s217_s9, %s853_s14 }
   0xe   : > { %p861_p12 = scmp.lt.s32.totalorder %s217_s9, %s217_s9  ;;  %p862_p13 = scmp.lt.s32.totalorder %s853_s14, %s853_s14 }
   0xf   : > { %p844_p8 = pneg %p1021_p7 }
  0x10   : > { %p863_p0 = por %p862_p13, %p861_p12 }
  0x11   : > { %p856_p10 = pnand %p854_p9, %p844_p8 }
  0x13   : > { %p857_p11 = pneg %p856_p10 }
  0x15   : > { %p864_p2 = pnand %p863_p0, %p857_p11 }
  0x17   : > { %867 = shalt.err (!%p864_p2)
}
  0x18   : > { %s937_s15 = smov 128   ;;  %s938_s16 = smov 8  }
  0x19   : > { %797 = dma.hbm_to_vmem [thread:$0]  (!%p1021_p7), %s1245_s1, 256, %s217_s9, [#allocation5], %s937_s15, %s937_s15, %s938_s16  }
  0x1a   : > { %p26_p3 = scmp.eq.s32.totalorder %s25_s13, 0  ;;  %p35_p6 = scmp.ne.s32.totalorder %s930_s26, %s926_s25 }
  0x1b   : > { %p36_p8 = scmp.eq.s32.totalorder %s934_s27, 0  ;;  %p803_p9 = scmp.lt.s32.totalorder %s934_s27, 2 }
  0x1c   : > { %s1043_s19 = scalar_select %p26_p3, %s930_s26, %s28_s12  }
  0x1d   : > { %p37_p10 = por %p36_p8, %p35_p6  ;;  %s245_s20 = sand.u32 1, %s930_s26  }
  0x1e   : > { %s662_s21 = sshll.u32 %s245_s20, 3  ;;  %s663_s22 = sshll.u32 %s934_s27, 7 }
  0x1f   : > { %s1050_s8 = scalar_lea.hbm %s1244_s0, %s663_s22  ;;  %s249_s10 = scalar_lea.vmem [#allocation2], %s662_s21 }
  0x20   : > { %s256_s9 = sshll.u32 %s249_s10, 4  ;;  %p1052_p7 = pnand %p803_p9, %p37_p10  ;;  %s257_s9 = int_to_ptr.vmem [resolvable:$true] %s256_s9 }
  0x21   : > { %s246_s12 = scalar_lea.sflag [#allocation3], %s245_s20  ;;  %s868_s14 = scalar_lea.hbm %s1050_s8, 128 }
  0x22   : > { %p869_p11 = scmp.ne.s32.totalorder %s1050_s8, %s868_s14  ;;  %p870_p12 = pneg %p1052_p7 }
  0x23   : > { %s873_s16 = scalar_lea.hbm %s1244_s0, 256  ;;  %p874_p2 = scmp.lt.s32.totalorder %s1050_s8, %s1244_s0 }
  0x24   : > { %p871_p13 = pnand %p870_p12, %p869_p11  ;;  %p875_p3 = scmp.lt.s32.totalorder %s873_s16, %s868_s14 }
  0x26   : > { %p872_p0 = pneg %p871_p13  ;;  %p876_p6 = por %p875_p3, %p874_p2 }
  0x28   : > { %p877_p8 = pnand %p876_p6, %p872_p0 }
  0x2a   : > { %880 = shalt.err (!%p877_p8)
}
  0x2b   : > { %s881_s21 = scalar_lea.vmem %s257_s9, 128  ;;  %s939_s20 = smov [#allocation2]  }
  0x2c   : > { %p882_p9 = scmp.ne.s32.totalorder %s257_s9, %s881_s21  ;;  %s886_s22 = sshll.u32 %s939_s20, 4  ;;  %s887_s22 = int_to_ptr.vmem [resolvable:$false] %s886_s22 }
  0x2d   : > { %s888_s23 = scalar_lea.vmem %s887_s22, 256  ;;  %p889_p11 = scmp.lt.s32.totalorder %s257_s9, %s887_s22 }
  0x2e   : > { %p884_p10 = pnand %p882_p9, %p870_p12  ;;  %p890_p13 = scmp.lt.s32.totalorder %s888_s23, %s881_s21 }
  0x30   : > { %p885_p1 = pneg %p884_p10  ;;  %p891_p4 = por %p890_p13, %p889_p11 }
  0x32   : > { %p892_p5 = pnand %p891_p4, %p885_p1 }
  0x34   : > { %895 = shalt.err (!%p892_p5)
}
  0x35   : > { %801 = dma.hbm_to_vmem [thread:$0]  (!%p1052_p7), %s1050_s8, 128, %s257_s9, %s246_s12  }
  0x36   : > { %p1259_p0 = scmp.ne.s32.totalorder %s1256_s30, 0 }
  0x37   : > { %s267_s24 = sand.u32 (!%p1259_p0), 1, %s926_s25   ;;  %p1260_p12 = scmp.ne.s32.totalorder (!%p1259_p0), %s1255_s29, 0 }
  0x38   : > { %265 = sbr.rel (%p1259_p0) target bundleno = 661 (0x295), region = 48  ;;  %s665_s10 = sshll.u32 (!%p1259_p0), %s267_s24, 3 }
  0x39   : > { %s268_s14 = scalar_lea.sflag (!%p1259_p0), [#allocation3], %s267_s24  ;;  %s271_s27 = scalar_lea.vmem (!%p1259_p0), [#allocation2], %s665_s10 }
  0x3d   : > { %913 = dma.done.wait (%p1260_p12), %s268_s14, 128  }
  0x3e   : > { %915 = vsyncadd (%p1260_p12), %s268_s14, 4294967168  ;;  %p1261_p1 = scmp.eq.s32.totalorder %s1001_s28, 0 }
  0x40   : > { %917 = dma.done.wait (%p1261_p1), [#allocation5], 256   ;;  %p1262_p4 = pmov %p1261_p1 }
  0x41   : > { %v940_v0 = vmov 0.0   ;;  %vm941_vm0 = vmmov 0   ;;  %v311_v1 = vld [vmem:[#allocation4 + $0x8] sm:$0xff]  ;;  %v310_v2 = vld [vmem:[#allocation4] sm:$0xff]  ;;  %v309_v3 = vld [vmem:[%s271_s27] sm:$0xff]  ;;  %vm319_vm1 = vcmask 130048  }
  0x42   : > { %919 = vsyncadd (%p1262_p4), [#allocation5], 4294967040  ;;  %711 = vmatprep.subr.mxu0 %v940_v0  ;;  %715 = vmatprep.mubr.msk.f32.mxu0 %vm941_vm0, %v940_v0  ;;  %v409_v4 = vld [vmem:[%s1247_s3 + $0x78] sm:$0xff]  ;;  %v408_v5 = vld [vmem:[%s1247_s3 + $0x70] sm:$0xff]  ;;  %p305_p5 = scmp.lt.s32.totalorder %s1001_s28, 1  ;;  %vm581_vm2 = vcmask 31744  }
  0x43   : > { %718 = vmatprep.subr.mxu1 %v940_v0  ;;  %750 = vmatprep.mubr.msk.f32.mxu1 %vm941_vm0, %v940_v0  ;;  %v407_v6 = vld [vmem:[%s1247_s3 + $0x68] sm:$0xff]  ;;  %v406_v7 = vld [vmem:[%s1247_s3 + $0x60] sm:$0xff]  ;;  %v405_v8 = vld [vmem:[%s1247_s3 + $0x58] sm:$0xff] }
  0x44   : > { %712 = vmatpush3.msra.mxu0 %v311_v1  ;;  %719 = vmatpush3.msra.mxu1 %v409_v4  ;;  %v404_v9 = vld [vmem:[%s1247_s3 + $0x50] sm:$0xff]  ;;  %v403_v10 = vld [vmem:[%s1247_s3 + $0x48] sm:$0xff]  ;;  %v402_v11 = vld [vmem:[%s1247_s3 + $0x40] sm:$0xff]  ;;  %s1268_s28 = smov (!%p305_p5, %s1001_s28), 1 }
  0x45   : > { %713 = vmatprep.subr.mxu0 %v940_v0  ;;  %720 = vmatprep.subr.mxu1 %v940_v0  ;;  %v401_v12 = vld [vmem:[%s1247_s3 + $0x38] sm:$0xff]  ;;  %v400_v13 = vld [vmem:[%s1247_s3 + $0x30] sm:$0xff]  ;;  %v399_v14 = vld [vmem:[%s1247_s3 + $0x28] sm:$0xff]  ;;  %s667_s24 = sshll.u32 %s1268_s28, 3 }
  0x46   : > { %714 = vmatpush3.msra.mxu0 %v310_v2  ;;  %721 = vmatpush3.msra.mxu1 %v408_v5  ;;  %v398_v15 = vld [vmem:[%s1247_s3 + $0x20] sm:$0xff]  ;;  %v397_v16 = vld [vmem:[%s1247_s3 + $0x18] sm:$0xff]  ;;  %v396_v17 = vld [vmem:[%s1247_s3 + $0x10] sm:$0xff]  ;;  %s308_s30 = scalar_lea.vmem %s1251_s7, %s667_s24 }
  0x47   : > { %716 = vmatmul.mubr.msk.f32.vlgmr.msra.gmra.mxu0 %vm319_vm1, %v309_v3  ;;  %722 = vmatprep.subr.mxu1 %v940_v0  ;;  %v395_v18 = vld [vmem:[%s1247_s3 + $0x8] sm:$0xff]  ;;  %v394_v19 = vld [vmem:[%s1247_s3] sm:$0xff]  ;;  %v503_v20 = vld [vmem:[%s1249_s5 + $0x78] sm:$0xff] }
  0x48   : > { %753 = vmatprep.subr.mxu0 %v940_v0  ;;  %723 = vmatpush3.msra.mxu1 %v407_v6  ;;  %v502_v21 = vld [vmem:[%s1249_s5 + $0x70] sm:$0xff]  ;;  %v501_v22 = vld [vmem:[%s1249_s5 + $0x68] sm:$0xff]  ;;  %v500_v23 = vld [vmem:[%s1249_s5 + $0x60] sm:$0xff] }
  0x49   : > { %785 = vmatprep.mubr.msk.f32.mxu0 %vm941_vm0, %v940_v0  ;;  %724 = vmatprep.subr.mxu1 %v940_v0  ;;  %v499_v24 = vld [vmem:[%s1249_s5 + $0x58] sm:$0xff]  ;;  %v498_v25 = vld [vmem:[%s1249_s5 + $0x50] sm:$0xff]  ;;  %v497_v26 = vld [vmem:[%s1249_s5 + $0x48] sm:$0xff] }
  0x4a   : > { %725 = vmatpush3.msra.mxu1 %v406_v7  ;;  %754 = vmatpush3.msra.mxu0 %v503_v20  ;;  %v496_v27 = vld [vmem:[%s1249_s5 + $0x40] sm:$0xff]  ;;  %v495_v28 = vld [vmem:[%s1249_s5 + $0x38] sm:$0xff]  ;;  %v494_v29 = vld [vmem:[%s1249_s5 + $0x30] sm:$0xff] }
  0x4b   : > { %726 = vmatprep.subr.mxu1 %v940_v0  ;;  %755 = vmatprep.subr.mxu0 %v940_v0  ;;  %v493_v30 = vld [vmem:[%s1249_s5 + $0x28] sm:$0xff]  ;;  %v492_v31 = vld [vmem:[%s1249_s5 + $0x20] sm:$0xff]  ;;  %v491_v32 = vld [vmem:[%s1249_s5 + $0x18] sm:$0xff] }
  0x4c   : > { %727 = vmatpush3.msra.mxu1 %v405_v8  ;;  %756 = vmatpush3.msra.mxu0 %v502_v21  ;;  %v668_v33 = vld [vmem:[%s1246_s2] ss:$0 sm:$0xff]  ;;  %v490_v38 = vld [vmem:[%s1249_s5 + $0x10] sm:$0xff]  ;;  %v489_v39 = vld [vmem:[%s1249_s5 + $0x8] sm:$0xff] }
  0x4d   : > { %728 = vmatprep.subr.mxu1 %v940_v0  ;;  %757 = vmatprep.subr.mxu0 %v940_v0  ;;  %v488_v40 = vld [vmem:[%s1249_s5] sm:$0xff] }
  0x4e   : > { %729 = vmatpush3.msra.mxu1 %v404_v9  ;;  %758 = vmatpush3.msra.mxu0 %v501_v22  ;;  %v670_v41 = vld [vmem:[%s1248_s4] ss:$0 sm:$0xff] }
  0x4f   : > { %730 = vmatprep.subr.mxu1 %v940_v0  ;;  %759 = vmatprep.subr.mxu0 %v940_v0  ;;  %v671_v46 = vld [vmem:[%s1250_s6] ss:$0 sm:$0xff] }
  0x50   : > { %731 = vmatpush3.msra.mxu1 %v403_v10  ;;  %760 = vmatpush3.msra.mxu0 %v500_v23 }
  0x51   : > { %732 = vmatprep.subr.mxu1 %v940_v0  ;;  %761 = vmatprep.subr.mxu0 %v940_v0 }
  0x52   : > { %733 = vmatpush3.msra.mxu1 %v402_v11  ;;  %762 = vmatpush3.msra.mxu0 %v499_v24 }
  0x53   : > { %734 = vmatprep.subr.mxu1 %v940_v0  ;;  %763 = vmatprep.subr.mxu0 %v940_v0 }
  0x54   : > { %735 = vmatpush3.msra.mxu1 %v401_v12  ;;  %764 = vmatpush3.msra.mxu0 %v498_v25 }
  0x55   : > { %736 = vmatprep.subr.mxu1 %v940_v0  ;;  %765 = vmatprep.subr.mxu0 %v940_v0 }
  0x56   : > { %737 = vmatpush3.msra.mxu1 %v400_v13  ;;  %766 = vmatpush3.msra.mxu0 %v497_v26 }
  0x57   : > { %738 = vmatprep.subr.mxu1 %v940_v0  ;;  %767 = vmatprep.subr.mxu0 %v940_v0 }
  0x58   : > { %739 = vmatpush3.msra.mxu1 %v399_v14  ;;  %768 = vmatpush3.msra.mxu0 %v496_v27 }
  0x59   : > { %740 = vmatprep.subr.mxu1 %v940_v0  ;;  %769 = vmatprep.subr.mxu0 %v940_v0 }
  0x5a   : > { %741 = vmatpush3.msra.mxu1 %v398_v15  ;;  %770 = vmatpush3.msra.mxu0 %v495_v28 }
  0x5b   : > { %742 = vmatprep.subr.mxu1 %v940_v0  ;;  %771 = vmatprep.subr.mxu0 %v940_v0 }
  0x5c   : > { %743 = vmatpush3.msra.mxu1 %v397_v16  ;;  %772 = vmatpush3.msra.mxu0 %v494_v29 }
  0x5d   : > { %744 = vmatprep.subr.mxu1 %v940_v0  ;;  %773 = vmatprep.subr.mxu0 %v940_v0 }
  0x5e   : > { %745 = vmatpush3.msra.mxu1 %v396_v17  ;;  %774 = vmatpush3.msra.mxu0 %v493_v30 }
  0x5f   : > { %746 = vmatprep.subr.mxu1 %v940_v0  ;;  %775 = vmatprep.subr.mxu0 %v940_v0 }
  0x60   : > { %747 = vmatpush3.msra.mxu1 %v395_v18  ;;  %776 = vmatpush3.msra.mxu0 %v492_v31 }
  0x61   : > { %748 = vmatprep.subr.mxu1 %v940_v0  ;;  %777 = vmatprep.subr.mxu0 %v940_v0 }
  0x62   : > { %749 = vmatpush3.msra.mxu1 %v394_v19  ;;  %778 = vmatpush3.msra.mxu0 %v491_v32 }
  0x63   : > { %779 = vmatprep.subr.mxu0 %v940_v0 }
  0x64   : > { %780 = vmatpush3.msra.mxu0 %v490_v38 }
  0x65   : > { %781 = vmatprep.subr.mxu0 %v940_v0 }
  0x66   : > { %782 = vmatpush3.msra.mxu0 %v489_v39 }
  0x67   : > { %783 = vmatprep.subr.mxu0 %v940_v0 }
  0x68   : > { %784 = vmatpush3.msra.mxu0 %v488_v40 }
 0x107   : > { %v389_v34 = vpop.f32.mrf.mxu0 }
 0x108   : > { %v390_v35 = vadd.f32 %v668_v33, %v389_v34 }
 0x109   : > { %v717_v36 = vpop.f32.mrf.mxu0 }
 0x10a   : > { %v393_v37 = vmax.f32 %v390_v35, 0.0 }
 0x10c   : > { %751 = vmatmul.mubr.f32.vlgmr.msra.gmra.mxu1 %v393_v37 }
 0x1cc   : > { %v483_v42 = vpop.f32.mrf.mxu1 }
 0x1cd   : > { %v484_v43 = vadd.f32 %v670_v41, %v483_v42 }
 0x1ce   : > { %v752_v44 = vpop.f32.mrf.mxu1 }
 0x1cf   : > { %v487_v45 = vmax.f32 %v484_v43, 0.0 }
 0x1d1   : > { %786 = vmatmul.mubr.f32.vlgmr.msra.gmra.mxu0 %v487_v45 }
 0x291   : > { %v577_v47 = vpop.f32.mrf.mxu0 }
 0x292   : > { %v578_v48 = vadd.f32 %v671_v46, %v577_v47 }
 0x293   : > { %v787_v49 = vpop.f32.mrf.mxu0 }
 0x294   : > { %582 = vst.msk [vmem:[%s308_s30] sm:$0xff] %vm581_vm2, %v578_v48 }
 0x295 PF: > { %p18_p7 = scmp.ge.s32.totalorder %s1026_s11, 4   ;;  %s1263_s24 = smov %s926_s25 }
 0x296   : > { %s1264_s25 = smov %s930_s26  ;;  %s1265_s26 = smov %s1043_s19 }
 0x297   : > { %s1266_s27 = smov %s1026_s11  ;;  %20 = sbr.rel (!%p18_p7) target bundleno = 4 (0x4), region = 92 }
 0x29c   :  { %602 = vsyncpa [#allocation3], 1 }
 0x29d   :  { %604 = vsyncpa [#allocation3 + $0x1], 1 }
 0x29e   :  { %605 = vsyncpa [#allocation5], 1 }

</bundles_post_ra>
